<compile_context>
chip_gen: v6e
topology: v6e:2x2x1
jax: 0.10.0
libtpu: 0.0.40
codegen_flags: <defaults>
</compile_context>

<pallas_src>
import functools

import jax
import jax.numpy as jnp
from jax.experimental import pallas as pl
from jax.experimental.pallas import tpu as pltpu


def _round_up(x, m):
    return ((x + m - 1) // m) * m


# ----------------------------- Pallas kernels ------------------------------ #
def _abs_cos(x, y, eps):
    # |x.y| / sqrt(max(||x||^2 * ||y||^2, eps^2)) — exactly matches
    # torch.nn.functional.cosine_similarity, which clamps w1*w2 by eps^2.
    dot = jnp.sum(x * y, axis=-1, keepdims=True)   # XLU lane reduce
    w1 = jnp.sum(x * x, axis=-1, keepdims=True)
    w2 = jnp.sum(y * y, axis=-1, keepdims=True)
    inv_norm = jax.lax.rsqrt(jnp.maximum(w1 * w2, eps * eps))   # EUP
    return jnp.abs(dot) * inv_norm


def _margin_kernel(qp_ref, ap_ref, qn_ref, an_ref, pos_ref, score_ref, *,
                   margin, eps):
    # qp/ap/qn/an: [block_n, H]    pos/score: [block_n, 1]
    qp = qp_ref[...].astype(jnp.float32)
    ap = ap_ref[...].astype(jnp.float32)
    qn = qn_ref[...].astype(jnp.float32)
    an = an_ref[...].astype(jnp.float32)

    pos = _abs_cos(qp, ap, eps)                     # [bn, 1]
    neg = _abs_cos(qn, an, eps)                     # [bn, 1]
    score = jnp.maximum(margin - pos + neg, 0.0)    # hinge

    pos_ref[...] = pos.astype(pos_ref.dtype)
    score_ref[...] = score.astype(score_ref.dtype)


def _pos_only_kernel(qp_ref, ap_ref, pos_ref, *, eps):
    qp = qp_ref[...].astype(jnp.float32)
    ap = ap_ref[...].astype(jnp.float32)
    pos_ref[...] = _abs_cos(qp, ap, eps).astype(pos_ref.dtype)


# ------------------------------ JAX wrapper -------------------------------- #
def _pick_block_rows(n_rows, hidden, n_inputs, itemsize):
    """Largest row tile (multiple of 8) whose double-buffered input blocks
    stay around ~8 MiB of VMEM (well under the scoped default on v5e/v6e/v7x)."""
    target_bytes = 8 * 1024 * 1024
    per_row = n_inputs * 2 * hidden * itemsize      # 2 = pipeline double buffer
    bn = max(8, min(2048, target_bytes // max(per_row, 1)))
    bn = (bn // 8) * 8
    return int(min(bn, _round_up(n_rows, 8)))


def margin_loss_pallas(q_pos, a_pos, q_neg=None, a_neg=None, *,
                       margin=0.5, eps=1e-8, reduction="mean"):
    """Mirrors MarginLoss.forward. q_*/a_*: [N, H].

    Returns:
      - pos-only path (q_neg is None): qa_pos_score [N]
      - 'none':  (score [N], qa_pos_score [N])
      - 'sum'/'mean': (loss scalar, qa_pos_score [N])
      - anything else: (0.0, qa_pos_score [N])   (PyTorch fallthrough)
    """
    N, H = q_pos.shape
    cparams = pltpu.CompilerParams(dimension_semantics=("parallel",))

    if q_neg is None:
        block_n = _pick_block_rows(N, H, 2, q_pos.dtype.itemsize)
        row_spec = pl.BlockSpec((block_n, H), lambda i: (i, 0))
        out_spec = pl.BlockSpec((block_n, 1), lambda i: (i, 0))
        pos = pl.pallas_call(
            functools.partial(_pos_only_kernel, eps=float(eps)),
            out_shape=jax.ShapeDtypeStruct((N, 1), jnp.float32),
            grid=(pl.cdiv(N, block_n),),
            in_specs=[row_spec, row_spec],
            out_specs=out_spec,
            compiler_params=cparams,
        )(q_pos, a_pos)
        return pos[:, 0]

    block_n = _pick_block_rows(N, H, 4, q_pos.dtype.itemsize)
    row_spec = pl.BlockSpec((block_n, H), lambda i: (i, 0))
    out_spec = pl.BlockSpec((block_n, 1), lambda i: (i, 0))

    pos, score = pl.pallas_call(
        functools.partial(_margin_kernel, margin=float(margin), eps=float(eps)),
        out_shape=(jax.ShapeDtypeStruct((N, 1), jnp.float32),
                   jax.ShapeDtypeStruct((N, 1), jnp.float32)),
        grid=(pl.cdiv(N, block_n),),
        in_specs=[row_spec, row_spec, row_spec, row_spec],
        out_specs=(out_spec, out_spec),
        compiler_params=cparams,
    )(q_pos, a_pos, q_neg, a_neg)

    pos = pos[:, 0]
    score = score[:, 0]

    # Reduction branch is cheap scalar glue; kept outside the kernel.
    if reduction == "sum":
        return score.sum(), pos
    if reduction == "mean":
        return score.mean(), pos
    if reduction == "none":
        return score, pos
    return jnp.float32(0.0), pos


# ------------------------------- reference --------------------------------- #
def ref_margin_loss(q_pos, a_pos, q_neg=None, a_neg=None, *,
                    margin=0.5, eps=1e-8, reduction="mean"):
    def abs_cos(x, y):
        dot = jnp.sum(x * y, axis=-1)
        w1 = jnp.sum(x * x, axis=-1)
        w2 = jnp.sum(y * y, axis=-1)
        return jnp.abs(dot / jnp.sqrt(jnp.maximum(w1 * w2, eps * eps)))

    pos = abs_cos(q_pos, a_pos)
    if q_neg is None:
        return pos
    neg = abs_cos(q_neg, a_neg)
    score = jnp.maximum(margin - pos + neg, 0.0)
    if reduction == "sum":
        return score.sum(), pos
    if reduction == "mean":
        return score.mean(), pos
    if reduction == "none":
        return score, pos
    return jnp.float32(0.0), pos


# ---------------------------------- main ------------------------------------ #
if __name__ == "__main__":
    MARGIN, EPS = 0.5, 1e-8
    key = jax.random.PRNGKey(0)

    # --- primary small demo: (N, H) = (8, 32) ---
    N, H = 8, 32
    kq, ka, kqn, kan = jax.random.split(key, 4)
    q_pos = jax.random.normal(kq, (N, H), jnp.float32)
    a_pos = jax.random.normal(ka, (N, H), jnp.float32)
    q_neg = jax.random.normal(kqn, (N, H), jnp.float32)
    a_neg = jax.random.normal(kan, (N, H), jnp.float32)

    loss, pos = margin_loss_pallas(q_pos, a_pos, q_neg, a_neg,
                                   margin=MARGIN, eps=EPS, reduction="mean")
    loss, pos = jax.block_until_ready((loss, pos))
    rloss, rpos = ref_margin_loss(q_pos, a_pos, q_neg, a_neg,
                                  margin=MARGIN, eps=EPS, reduction="mean")
    assert pos.shape == (N,)
    assert jnp.allclose(loss, rloss, atol=1e-5, rtol=1e-5), "loss mismatch (mean)"
    assert jnp.allclose(pos, rpos, atol=1e-5, rtol=1e-5), "pos score mismatch"

    # 'none' reduction.
    score_n, pos_n = margin_loss_pallas(q_pos, a_pos, q_neg, a_neg,
                                        margin=MARGIN, eps=EPS, reduction="none")
    score_n, pos_n = jax.block_until_ready((score_n, pos_n))
    rscore_n, rpos_n = ref_margin_loss(q_pos, a_pos, q_neg, a_neg,
                                       margin=MARGIN, eps=EPS, reduction="none")
    assert jnp.allclose(score_n, rscore_n, atol=1e-5, rtol=1e-5), "score mismatch (none)"
    assert jnp.allclose(pos_n, rpos_n, atol=1e-5, rtol=1e-5), "pos mismatch (none)"

    # Positive-only path (q_neg is None).
    pos_only = jax.block_until_ready(
        margin_loss_pallas(q_pos, a_pos, margin=MARGIN, eps=EPS))
    r_pos_only = ref_margin_loss(q_pos, a_pos, eps=EPS)
    assert jnp.allclose(pos_only, r_pos_only, atol=1e-5, rtol=1e-5), "pos-only mismatch"

    # --- ragged shapes: exercises the un-padded, masked edge-block path ---
    N2, H2 = 20, 48
    kq2, ka2, kqn2, kan2 = jax.random.split(jax.random.PRNGKey(1), 4)
    q_pos2 = jax.random.normal(kq2, (N2, H2), jnp.float32)
    a_pos2 = jax.random.normal(ka2, (N2, H2), jnp.float32)
    q_neg2 = jax.random.normal(kqn2, (N2, H2), jnp.float32)
    a_neg2 = jax.random.normal(kan2, (N2, H2), jnp.float32)

    loss2, pos2 = margin_loss_pallas(q_pos2, a_pos2, q_neg2, a_neg2,
                                     margin=MARGIN, eps=EPS, reduction="sum")
    loss2, pos2 = jax.block_until_ready((loss2, pos2))
    rloss2, rpos2 = ref_margin_loss(q_pos2, a_pos2, q_neg2, a_neg2,
                                    margin=MARGIN, eps=EPS, reduction="sum")
    assert pos2.shape == (N2,)
    assert jnp.allclose(loss2, rloss2, atol=1e-5, rtol=1e-5), "loss mismatch (ragged sum)"
    assert jnp.allclose(pos2, rpos2, atol=1e-5, rtol=1e-5), "pos mismatch (ragged)"

    print("KERNEL_OK")
</pallas_src>

<mosaic_0001>
module attributes {stable_mosaic.version = 11 : i64} {
  func.func @_margin_kernel(%arg0: i32, %arg1: memref<8x32xf32, #tpu.memory_space<vmem>>, %arg2: memref<8x32xf32, #tpu.memory_space<vmem>>, %arg3: memref<8x32xf32, #tpu.memory_space<vmem>>, %arg4: memref<8x32xf32, #tpu.memory_space<vmem>>, %arg5: memref<8x1xf32, #tpu.memory_space<vmem>>, %arg6: memref<8x1xf32, #tpu.memory_space<vmem>>) attributes {dimension_semantics = [#tpu.dimension_semantics<parallel>], iteration_bounds = array<i64: 1>, scalar_prefetch = 0 : i64, scratch_operands = 0 : i64, tpu.core_type = #tpu.core_type<tc>, window_params = [{transform_indices = @transform_0, window_bounds = array<i64: 8, 32>}, {transform_indices = @transform_1, window_bounds = array<i64: 8, 32>}, {transform_indices = @transform_2, window_bounds = array<i64: 8, 32>}, {transform_indices = @transform_3, window_bounds = array<i64: 8, 32>}, {transform_indices = @transform_4, window_bounds = array<i64: 8, 1>}, {transform_indices = @transform_5, window_bounds = array<i64: 8, 1>}]} {
    %c0 = arith.constant 0 : index
    %c0_0 = arith.constant 0 : index
    %0 = vector.load %arg1[%c0, %c0_0] : memref<8x32xf32, #tpu.memory_space<vmem>>, vector<8x32xf32>
    %c0_1 = arith.constant 0 : index
    %c0_2 = arith.constant 0 : index
    %1 = vector.load %arg2[%c0_1, %c0_2] : memref<8x32xf32, #tpu.memory_space<vmem>>, vector<8x32xf32>
    %c0_3 = arith.constant 0 : index
    %c0_4 = arith.constant 0 : index
    %2 = vector.load %arg3[%c0_3, %c0_4] : memref<8x32xf32, #tpu.memory_space<vmem>>, vector<8x32xf32>
    %c0_5 = arith.constant 0 : index
    %c0_6 = arith.constant 0 : index
    %3 = vector.load %arg4[%c0_5, %c0_6] : memref<8x32xf32, #tpu.memory_space<vmem>>, vector<8x32xf32>
    %4 = arith.mulf %0, %1 : vector<8x32xf32>
    %cst = arith.constant dense<0.000000e+00> : vector<8xf32>
    %5 = vector.multi_reduction <add>, %4, %cst [1] : vector<8x32xf32> to vector<8xf32>
    %6 = vector.shape_cast %5 : vector<8xf32> to vector<8x1xf32>
    %7 = arith.mulf %0, %0 : vector<8x32xf32>
    %cst_7 = arith.constant dense<0.000000e+00> : vector<8xf32>
    %8 = vector.multi_reduction <add>, %7, %cst_7 [1] : vector<8x32xf32> to vector<8xf32>
    %9 = vector.shape_cast %8 : vector<8xf32> to vector<8x1xf32>
    %10 = arith.mulf %1, %1 : vector<8x32xf32>
    %cst_8 = arith.constant dense<0.000000e+00> : vector<8xf32>
    %11 = vector.multi_reduction <add>, %10, %cst_8 [1] : vector<8x32xf32> to vector<8xf32>
    %12 = vector.shape_cast %11 : vector<8xf32> to vector<8x1xf32>
    %13 = arith.mulf %9, %12 : vector<8x1xf32>
    %cst_9 = arith.constant 1.000000e-16 : f32
    %14 = vector.broadcast %cst_9 : f32 to vector<8x1xf32>
    %15 = arith.maximumf %13, %14 : vector<8x1xf32>
    %16 = math.rsqrt %15 : vector<8x1xf32>
    %17 = math.absf %6 : vector<8x1xf32>
    %18 = arith.mulf %17, %16 : vector<8x1xf32>
    %19 = arith.mulf %2, %3 : vector<8x32xf32>
    %cst_10 = arith.constant dense<0.000000e+00> : vector<8xf32>
    %20 = vector.multi_reduction <add>, %19, %cst_10 [1] : vector<8x32xf32> to vector<8xf32>
    %21 = vector.shape_cast %20 : vector<8xf32> to vector<8x1xf32>
    %22 = arith.mulf %2, %2 : vector<8x32xf32>
    %cst_11 = arith.constant dense<0.000000e+00> : vector<8xf32>
    %23 = vector.multi_reduction <add>, %22, %cst_11 [1] : vector<8x32xf32> to vector<8xf32>
    %24 = vector.shape_cast %23 : vector<8xf32> to vector<8x1xf32>
    %25 = arith.mulf %3, %3 : vector<8x32xf32>
    %cst_12 = arith.constant dense<0.000000e+00> : vector<8xf32>
    %26 = vector.multi_reduction <add>, %25, %cst_12 [1] : vector<8x32xf32> to vector<8xf32>
    %27 = vector.shape_cast %26 : vector<8xf32> to vector<8x1xf32>
    %28 = arith.mulf %24, %27 : vector<8x1xf32>
    %cst_13 = arith.constant 1.000000e-16 : f32
    %29 = vector.broadcast %cst_13 : f32 to vector<8x1xf32>
    %30 = arith.maximumf %28, %29 : vector<8x1xf32>
    %31 = math.rsqrt %30 : vector<8x1xf32>
    %32 = math.absf %21 : vector<8x1xf32>
    %33 = arith.mulf %32, %31 : vector<8x1xf32>
    %cst_14 = arith.constant 5.000000e-01 : f32
    %34 = vector.broadcast %cst_14 : f32 to vector<8x1xf32>
    %35 = arith.subf %34, %18 : vector<8x1xf32>
    %36 = arith.addf %35, %33 : vector<8x1xf32>
    %cst_15 = arith.constant 0.000000e+00 : f32
    %37 = vector.broadcast %cst_15 : f32 to vector<8x1xf32>
    %38 = arith.maximumf %36, %37 : vector<8x1xf32>
    %c0_16 = arith.constant 0 : index
    %c0_17 = arith.constant 0 : index
    %39 = vector.load %arg5[%c0_16, %c0_17] : memref<8x1xf32, #tpu.memory_space<vmem>>, vector<8x1xf32>
    tpu.vector_store %arg5[%c0_16, %c0_17], %18 {strides = array<i32>} : memref<8x1xf32, #tpu.memory_space<vmem>>, vector<8x1xf32>,
    %c0_18 = arith.constant 0 : index
    %c0_19 = arith.constant 0 : index
    %40 = vector.load %arg6[%c0_18, %c0_19] : memref<8x1xf32, #tpu.memory_space<vmem>>, vector<8x1xf32>
    tpu.vector_store %arg6[%c0_18, %c0_19], %38 {strides = array<i32>} : memref<8x1xf32, #tpu.memory_space<vmem>>, vector<8x1xf32>,
    return
  }
  func.func @transform_0(%arg0: i32) -> (i32, i32) {
    %c0_i32 = arith.constant 0 : i32
    %c0_i32_0 = arith.constant 0 : i32
    return %arg0, %c0_i32 : i32, i32
  }
  func.func @transform_1(%arg0: i32) -> (i32, i32) {
    %c0_i32 = arith.constant 0 : i32
    %c0_i32_0 = arith.constant 0 : i32
    return %arg0, %c0_i32 : i32, i32
  }
  func.func @transform_2(%arg0: i32) -> (i32, i32) {
    %c0_i32 = arith.constant 0 : i32
    %c0_i32_0 = arith.constant 0 : i32
    return %arg0, %c0_i32 : i32, i32
  }
  func.func @transform_3(%arg0: i32) -> (i32, i32) {
    %c0_i32 = arith.constant 0 : i32
    %c0_i32_0 = arith.constant 0 : i32
    return %arg0, %c0_i32 : i32, i32
  }
  func.func @transform_4(%arg0: i32) -> (i32, i32) {
    %c0_i32 = arith.constant 0 : i32
    %c0_i32_0 = arith.constant 0 : i32
    return %arg0, %c0_i32 : i32, i32
  }
  func.func @transform_5(%arg0: i32) -> (i32, i32) {
    %c0_i32 = arith.constant 0 : i32
    %c0_i32_0 = arith.constant 0 : i32
    return %arg0, %c0_i32 : i32, i32
  }
}

</mosaic_0001>

<bundles_post_ra>
// kernel: tpu_custom_call.1
= control target key start
LH: loop header
LB: loop body
LE: loop exit
PB: predicated region body
PF: predicated region fallthrough
CT: control target
= control target key end

     0   :  { %11 = vsyncpa [#allocation3], 0  ;;  %s274_s0 = inlined_call_operand.hbm [shape: f32[8,32], index: 0, kind: input, shape index: {}]   ;;  %s275_s1 = inlined_call_operand.hbm [shape: f32[8,32], index: 1, kind: input, shape index: {}]   ;;  %s276_s2 = inlined_call_operand.hbm [shape: f32[8,32], index: 2, kind: input, shape index: {}]   ;;  %s277_s3 = inlined_call_operand.hbm [shape: f32[8,32], index: 3, kind: input, shape index: {}]   ;;  %s278_s4 = inlined_call_operand.vmem [shape: f32[8,1], index: 4, kind: output, shape index: {0}]   ;;  %s279_s5 = inlined_call_operand.vmem [shape: f32[8,1], index: 5, kind: output, shape index: {1}]  }
   0x1   :  { %12 = vsyncpa [#allocation5], 0 }
   0x2   :  { %13 = vsyncpa [#allocation8], 0  ;;  %s216_s18 = smov [#allocation4]   ;;  %s217_s20 = smov [#allocation2]  }
   0x3   :  { %s30_s19 = sshll.u32 %s216_s18, 4  ;;  %s20_s21 = sshll.u32 %s217_s20, 4  ;;  %s31_s19 = int_to_ptr.vmem [resolvable:$true] %s30_s19  ;;  %s21_s21 = int_to_ptr.vmem [resolvable:$true] %s20_s21 }
   0x4   :  { %s138_s22 = scalar_lea.vmem %s31_s19, 128  ;;  %p143_p1 = scmp.lt.s32.totalorder %s31_s19, %s31_s19 }
   0x5   :  { %p139_p0 = scmp.ne.s32.totalorder %s31_s19, %s138_s22  ;;  %p144_p2 = scmp.lt.s32.totalorder %s138_s22, %s138_s22 }
   0x7   :  { %p145_p3 = por %p144_p2, %p143_p1 }
   0x9   :  { %p146_p4 = pnand %p145_p3, %p139_p0 }
   0xb   :  { %149 = shalt.err (!%p146_p4)
}
   0xc   :  { %33 = dma.hbm_to_vmem [thread:$0]  %s275_s1, 128, %s31_s19, [#allocation5]  }
   0xd   :  { %s158_s25 = scalar_lea.vmem %s21_s21, 128  ;;  %p163_p6 = scmp.lt.s32.totalorder %s21_s21, %s21_s21 }
   0xe   :  { %p159_p5 = scmp.ne.s32.totalorder %s21_s21, %s158_s25  ;;  %p164_p7 = scmp.lt.s32.totalorder %s158_s25, %s158_s25 }
  0x10   :  { %p165_p8 = por %p164_p7, %p163_p6 }
  0x12   :  { %p166_p9 = pnand %p165_p8, %p159_p5 }
  0x14   :  { %169 = shalt.err (!%p166_p9)
}
  0x15   :  { %23 = dma.hbm_to_vmem [thread:$0]  %s274_s0, 128, %s21_s21, [#allocation3]  }
  0x16   :  { %s218_s28 = smov [#allocation6]   ;;  %s219_s30 = smov [#allocation7]  }
  0x17   :  { %s40_s29 = sshll.u32 %s218_s28, 4  ;;  %s50_s6 = sshll.u32 %s219_s30, 4  ;;  %s41_s29 = int_to_ptr.vmem [resolvable:$true] %s40_s29  ;;  %s51_s6 = int_to_ptr.vmem [resolvable:$true] %s50_s6 }
  0x18   :  { %s178_s7 = scalar_lea.vmem %s41_s29, 128  ;;  %p183_p11 = scmp.lt.s32.totalorder %s41_s29, %s41_s29 }
  0x19   :  { %p179_p10 = scmp.ne.s32.totalorder %s41_s29, %s178_s7  ;;  %p184_p12 = scmp.lt.s32.totalorder %s178_s7, %s178_s7 }
  0x1b   :  { %p185_p13 = por %p184_p12, %p183_p11 }
  0x1d   :  { %p186_p0 = pnand %p185_p13, %p179_p10 }
  0x1f   :  { %189 = shalt.err (!%p186_p0)
}
  0x20   :  { %43 = dma.hbm_to_vmem [thread:$0]  %s276_s2, 128, %s41_s29, [#allocation5]  }
  0x21   :  { %s198_s9 = scalar_lea.vmem %s51_s6, 128  ;;  %p203_p2 = scmp.lt.s32.totalorder %s51_s6, %s51_s6 }
  0x22   :  { %p199_p1 = scmp.ne.s32.totalorder %s51_s6, %s198_s9  ;;  %p204_p3 = scmp.lt.s32.totalorder %s198_s9, %s198_s9 }
  0x24   :  { %p205_p4 = por %p204_p3, %p203_p2 }
  0x26   :  { %p206_p5 = pnand %p205_p4, %p199_p1 }
  0x28   :  { %209 = shalt.err (!%p206_p5)
}
  0x29   :  { %53 = dma.hbm_to_vmem [thread:$0]  %s277_s3, 128, %s51_s6, [#allocation8]  }
  0x2a   :  { %210 = dma.done.wait [#allocation3], 128  }
  0x2b   :  { %211 = vsyncadd [#allocation3], 4294967168 }
  0x2c   :  { %212 = dma.done.wait [#allocation5], 256  }
  0x2d   :  { %213 = vsyncadd [#allocation5], 4294967040 }
  0x2e   :  { %214 = dma.done.wait [#allocation8], 128  }
  0x2f   :  { %215 = vsyncadd [#allocation8], 4294967168  ;;  %v68_v0 = vld [vmem:[#allocation6] sm:$0xff]  ;;  %vm71_vm0 = vcmask 261120   ;;  %v66_v1 = vld [vmem:[#allocation2] sm:$0xff]  ;;  %vm108_vm1 = vcmask 7168  }
  0x30   :  { %v69_v2 = vld [vmem:[#allocation7] sm:$0xff]  ;;  %v92_v3 = vmul.f32 %v68_v0, %v68_v0  ;;  %v75_v4 = vmul.f32 %v66_v1, %v66_v1  ;;  %v67_v6 = vld [vmem:[#allocation4] sm:$0xff] }
  0x31   :  { %v96_v5 = vmul.f32 %v69_v2, %v69_v2  ;;  %v79_v7 = vmul.f32 %v67_v6, %v67_v6  ;;  %v88_v12 = vmul.f32 %v69_v2, %v68_v0  ;;  %v70_v13 = vmul.f32 %v67_v6, %v66_v1 }
  0x32   :  { %v93_v8 = vsel %vm71_vm0, %v92_v3, 0.0  ;;  %v76_v9 = vsel %vm71_vm0, %v75_v4, 0.0 }
  0x33   :  { %94 = vadd.xlane.f32.xlu1 %v93_v8  ;;  %77 = vadd.xlane.f32.xlu0 %v76_v9  ;;  %v97_v10 = vsel %vm71_vm0, %v96_v5, 0.0  ;;  %v80_v11 = vsel %vm71_vm0, %v79_v7, 0.0  ;;  %v89_v14 = vsel %vm71_vm0, %v88_v12, 0.0  ;;  %v72_v15 = vsel %vm71_vm0, %v70_v13, 0.0 }
  0x37   :  { %98 = vadd.xlane.f32.xlu1 %v97_v10  ;;  %81 = vadd.xlane.f32.xlu0 %v80_v11 }
  0x3b   :  { %90 = vadd.xlane.f32.xlu1 %v89_v14  ;;  %73 = vadd.xlane.f32.xlu0 %v72_v15 }
  0xbc   :  { %v95_v16 = vpop.xlane.xlu1 %94  ;;  %v78_v17 = vpop.xlane.xlu0 %77 }
  0xc0   :  { %v99_v18 = vpop.xlane.xlu1 %98  ;;  %v82_v19 = vpop.xlane.xlu0 %81 }
  0xc1   :  { %v100_v20 = vmul.f32 %v99_v18, %v95_v16  ;;  %v83_v21 = vmul.f32 %v82_v19, %v78_v17 }
  0xc3   :  { %v101_v22 = vmax.f32 %v100_v20, 1e-16  ;;  %v84_v23 = vmax.f32 %v83_v21, 1e-16 }
  0xc4   :  { %v74_v24 = vpop.xlane.xlu0 %73  ;;  %v91_v25 = vpop.xlane.xlu1 %90 }
  0xc5   :  { %126 = vrsqrt.f32 %v101_v22  ;;  %v86_v26 = vand.u32 2147483647, %v74_v24  ;;  %v103_v28 = vand.u32 2147483647, %v91_v25 }
  0xc6   :  { %128 = vrsqrt.f32 %v84_v23 }
  0xd2   :  { %v127_v27 = vpop.eup %126 }
  0xd3   :  { %v129_v29 = vpop.eup %128  ;;  %v104_v31 = vmul.f32 %v127_v27, %v103_v28 }
  0xd4   :  { %v87_v30 = vmul.f32 %v129_v29, %v86_v26 }
  0xd6   :  { %v105_v32 = vsub.f32 0.5, %v87_v30  ;;  %109 = vst.msk [vmem:[%s278_s4] sm:$0xff] %vm108_vm1, %v87_v30 }
  0xd8   :  { %v106_v33 = vadd.f32 %v105_v32, %v104_v31 }
  0xda   :  { %v107_v34 = vmax.f32 %v106_v33, 0.0 }
  0xdc   :  { %110 = vst.msk [vmem:[%s279_s5] sm:$0xff] %vm108_vm1, %v107_v34 }
  0xdd   :  { %119 = vsyncpa [#allocation3], 1 }
  0xde   :  { %120 = vsyncpa [#allocation5], 1 }
  0xdf   :  { %121 = vsyncpa [#allocation8], 1 }

</bundles_post_ra>
